<compile_context>
chip_gen: v7x
topology: tpu7x:2x2x1
jax: 0.10.0
libtpu: 0.0.40
codegen_flags: <defaults>
</compile_context>

<pallas_src>
import jax
import jax.numpy as jnp
from jax.experimental import pallas as pl
from jax.experimental.pallas import tpu as pltpu


_LANE = 1024                      # lane-dense flat width (multiple of 128)
_BLOCK_BYTES = 4 * 1024 * 1024    # ~4 MiB per block per ref
_MIN_STEPS = 4                    # keep pipelining + v7x dual-TC sharding alive
_SMALL_N = 1 << 20                # below this, plain jnp beats a kernel launch
_VMEM_LIMIT = 48 * 1024 * 1024    # > default scoped limits, < v7x 64 MiB


def _loss_dloss_kernel(mo_ref, yt_ref, loss_ref, dloss_ref):
    diff = mo_ref[...] - yt_ref[...]
    loss_ref[...] = diff * diff
    dloss_ref[...] = diff + diff          # 2 * diff, dtype-preserving


def _loss_only_kernel(mo_ref, yt_ref, loss_ref):
    diff = mo_ref[...] - yt_ref[...]
    loss_ref[...] = diff * diff


def _round_up(x, m):
    return -(-x // m) * m


def _pick_tm(rows, width, itemsize):
    """Row-tile size: ~4 MiB blocks, multiple of 8, >= _MIN_STEPS grid steps."""
    if rows <= 8:
        return rows                                        # single full block
    tm = max(8, (_BLOCK_BYTES // (width * itemsize)) // 8 * 8)
    tm = min(tm, _round_up(rows, 8))
    if pl.cdiv(rows, tm) < _MIN_STEPS:
        tm = min(tm, max(8, _round_up(pl.cdiv(rows, _MIN_STEPS), 8)))
    return tm


def _sqd_loss(orig_shape, d, dtype):
    # Lazy constant Hessian: 2*I_D broadcast over leading dims. Consumers
    # should use it symbolically; materializing it costs the M*D^2 write.
    return jnp.broadcast_to(2 * jnp.eye(d, dtype=dtype), orig_shape + (d,))


def autograd_loss(model_out, y_true, only_loss=False, *, use_pallas=None):
    """Pallas implementation of AutogradLoss.forward with default MSELoss."""
    assert model_out.shape == y_true.shape
    orig_shape = model_out.shape
    dtype = model_out.dtype
    d = orig_shape[-1]
    n = model_out.size
    itemsize = jnp.dtype(dtype).itemsize

    if use_pallas is None:
        use_pallas = n >= _SMALL_N

    if not use_pallas:
        # Small-input fast path: fused XLA elementwise is optimal here.
        diff = model_out - y_true
        loss = diff * diff
        if only_loss:
            return loss
        return loss, diff + diff, _sqd_loss(orig_shape, d, dtype)

    # ---- choose a zero-copy (or minimally padded) lane-dense 2-D layout ----
    if d % 128 == 0:
        rows, width = n // d, d                   # natural view, free reshape
        mo2 = model_out.reshape(rows, width)
        yt2 = y_true.reshape(rows, width)
        pad = 0
    elif n % _LANE == 0:
        rows, width = n // _LANE, _LANE           # flat view, free reshape
        mo2 = model_out.reshape(rows, width)
        yt2 = y_true.reshape(rows, width)
        pad = 0
    else:
        width = _LANE                             # ragged: minimal pad only
        rows = _round_up(pl.cdiv(n, _LANE), 8)
        pad = rows * _LANE - n
        mo2 = jnp.pad(model_out.reshape(-1), (0, pad)).reshape(rows, width)
        yt2 = jnp.pad(y_true.reshape(-1), (0, pad)).reshape(rows, width)

    tm = _pick_tm(rows, width, itemsize)
    grid = (pl.cdiv(rows, tm),)                   # edge block masked by Pallas
    blk = pl.BlockSpec((tm, width), lambda i: (i, 0))
    cparams = pltpu.CompilerParams(
        dimension_semantics=("parallel",),        # shards grid across TCs on v7x
        vmem_limit_bytes=_VMEM_LIMIT,
    )

    if only_loss:
        ce = pl.CostEstimate(flops=2 * n, transcendentals=0,
                             bytes_accessed=3 * n * itemsize)
        loss2 = pl.pallas_call(
            _loss_only_kernel,
            out_shape=jax.ShapeDtypeStruct((rows, width), dtype),
            grid_spec=pl.GridSpec(grid=grid, in_specs=[blk, blk], out_specs=blk),
            compiler_params=cparams,
            cost_estimate=ce,
        )(mo2, yt2)
        if pad:
            return loss2.reshape(-1)[:n].reshape(orig_shape)
        return loss2.reshape(orig_shape)

    ce = pl.CostEstimate(flops=3 * n, transcendentals=0,
                         bytes_accessed=4 * n * itemsize)
    loss2, dloss2 = pl.pallas_call(
        _loss_dloss_kernel,
        out_shape=(
            jax.ShapeDtypeStruct((rows, width), dtype),   # loss
            jax.ShapeDtypeStruct((rows, width), dtype),   # d_loss
        ),
        grid_spec=pl.GridSpec(grid=grid, in_specs=[blk, blk],
                              out_specs=[blk, blk]),
        compiler_params=cparams,
        cost_estimate=ce,
    )(mo2, yt2)

    if pad:
        loss = loss2.reshape(-1)[:n].reshape(orig_shape)
        d_loss = dloss2.reshape(-1)[:n].reshape(orig_shape)
    else:
        loss = loss2.reshape(orig_shape)
        d_loss = dloss2.reshape(orig_shape)

    return loss, d_loss, _sqd_loss(orig_shape, d, dtype)


def _check(mo, yt, loss, d_loss, sqd_loss, atol=1e-5):
    d = mo.shape[-1]
    ref_loss = (mo - yt) ** 2
    ref_dloss = 2.0 * (mo - yt)
    ref_sqd = jnp.broadcast_to(2.0 * jnp.eye(d, dtype=mo.dtype),
                               mo.shape + (d,))
    assert loss.shape == mo.shape
    assert d_loss.shape == mo.shape
    assert sqd_loss.shape == mo.shape + (d,)
    assert jnp.allclose(loss, ref_loss, atol=atol)
    assert jnp.allclose(d_loss, ref_dloss, atol=atol)
    assert jnp.allclose(sqd_loss, ref_sqd, atol=atol)


if __name__ == "__main__":
    key = jax.random.PRNGKey(0)
    k1, k2, k3, k4 = jax.random.split(key, 4)

    # 1) Tiny shape from the module spec -> small-input fast path (plain jnp).
    B, S, D = 2, 8, 32
    mo_s = jax.random.normal(k1, (B, S, D), dtype=jnp.float32)
    yt_s = jax.random.normal(k2, (B, S, D), dtype=jnp.float32)
    out_s = autograd_loss(mo_s, yt_s)
    jax.block_until_ready(out_s)
    _check(mo_s, yt_s, *out_s)

    # 2) Pallas path, natural zero-copy layout (D % 128 == 0).
    B2, S2, D2 = 2, 64, 128
    mo = jax.random.normal(k3, (B2, S2, D2), dtype=jnp.float32)
    yt = jax.random.normal(k4, (B2, S2, D2), dtype=jnp.float32)
    loss, d_loss, sqd_loss = autograd_loss(mo, yt, use_pallas=True)
    jax.block_until_ready((loss, d_loss, sqd_loss))
    _check(mo, yt, loss, d_loss, sqd_loss)

    loss_only = autograd_loss(mo, yt, only_loss=True, use_pallas=True)
    jax.block_until_ready(loss_only)
    assert jnp.allclose(loss_only, (mo - yt) ** 2, atol=1e-5)

    # 3) Pallas path, ragged flat layout (D not a multiple of 128).
    mo_r = jax.random.normal(k1, (2, 8, 40), dtype=jnp.float32)
    yt_r = jax.random.normal(k2, (2, 8, 40), dtype=jnp.float32)
    out_r = autograd_loss(mo_r, yt_r, use_pallas=True)
    jax.block_until_ready(out_r)
    _check(mo_r, yt_r, *out_r)

    # TODO(synk): arbitrary user-supplied loss_func (generic autograd) is not
    # translatable; only the default MSELoss(reduction='none') analytic
    # grad/Hessian is implemented.
    print("KERNEL_OK")
</pallas_src>

<mosaic_0001>
module attributes {stable_mosaic.version = 11 : i64} {
  func.func @_loss_dloss_kernel(%arg0: i32, %arg1: memref<32x128xf32, #tpu.memory_space<vmem>>, %arg2: memref<32x128xf32, #tpu.memory_space<vmem>>, %arg3: memref<32x128xf32, #tpu.memory_space<vmem>>, %arg4: memref<32x128xf32, #tpu.memory_space<vmem>>) attributes {dimension_semantics = [#tpu.dimension_semantics<parallel>], iteration_bounds = array<i64: 4>, scalar_prefetch = 0 : i64, scratch_operands = 0 : i64, tpu.core_type = #tpu.core_type<tc>, window_params = [{transform_indices = @transform_0, window_bounds = array<i64: 32, 128>}, {transform_indices = @transform_1, window_bounds = array<i64: 32, 128>}, {transform_indices = @transform_2, window_bounds = array<i64: 32, 128>}, {transform_indices = @transform_3, window_bounds = array<i64: 32, 128>}]} {
    %c0 = arith.constant 0 : index
    %c0_0 = arith.constant 0 : index
    %0 = vector.load %arg1[%c0, %c0_0] : memref<32x128xf32, #tpu.memory_space<vmem>>, vector<32x128xf32>
    %c0_1 = arith.constant 0 : index
    %c0_2 = arith.constant 0 : index
    %1 = vector.load %arg2[%c0_1, %c0_2] : memref<32x128xf32, #tpu.memory_space<vmem>>, vector<32x128xf32>
    %2 = arith.subf %0, %1 : vector<32x128xf32>
    %3 = arith.mulf %2, %2 : vector<32x128xf32>
    %c0_3 = arith.constant 0 : index
    %c0_4 = arith.constant 0 : index
    %4 = vector.load %arg3[%c0_3, %c0_4] : memref<32x128xf32, #tpu.memory_space<vmem>>, vector<32x128xf32>
    tpu.vector_store %arg3[%c0_3, %c0_4], %3 {strides = array<i32>} : memref<32x128xf32, #tpu.memory_space<vmem>>, vector<32x128xf32>,
    %5 = arith.addf %2, %2 : vector<32x128xf32>
    %c0_5 = arith.constant 0 : index
    %c0_6 = arith.constant 0 : index
    %6 = vector.load %arg4[%c0_5, %c0_6] : memref<32x128xf32, #tpu.memory_space<vmem>>, vector<32x128xf32>
    tpu.vector_store %arg4[%c0_5, %c0_6], %5 {strides = array<i32>} : memref<32x128xf32, #tpu.memory_space<vmem>>, vector<32x128xf32>,
    return
  }
  func.func @transform_0(%arg0: i32) -> (i32, i32) {
    %c0_i32 = arith.constant 0 : i32
    %c0_i32_0 = arith.constant 0 : i32
    return %arg0, %c0_i32 : i32, i32
  }
  func.func @transform_1(%arg0: i32) -> (i32, i32) {
    %c0_i32 = arith.constant 0 : i32
    %c0_i32_0 = arith.constant 0 : i32
    return %arg0, %c0_i32 : i32, i32
  }
  func.func @transform_2(%arg0: i32) -> (i32, i32) {
    %c0_i32 = arith.constant 0 : i32
    %c0_i32_0 = arith.constant 0 : i32
    return %arg0, %c0_i32 : i32, i32
  }
  func.func @transform_3(%arg0: i32) -> (i32, i32) {
    %c0_i32 = arith.constant 0 : i32
    %c0_i32_0 = arith.constant 0 : i32
    return %arg0, %c0_i32 : i32, i32
  }
}

</mosaic_0001>

<bundles_post_ra>
// kernel: tpu_custom_call.1
= control target key start
LH: loop header
LB: loop body
LE: loop exit
PB: predicated region body
PF: predicated region fallthrough
CT: control target
= control target key end

     0   :  { %9 = vsyncpa [#allocation3], 0  ;;  %s985_s0 = inlined_call_operand.hbm [shape: f32[128,128], index: 0, kind: input, shape index: {}]   ;;  %s986_s1 = inlined_call_operand.hbm [shape: f32[128,128], index: 1, kind: input, shape index: {}]   ;;  %s987_s2 = inlined_call_operand.hbm [shape: f32[128,128], index: 2, kind: output, shape index: {0}]   ;;  %s988_s3 = inlined_call_operand.hbm [shape: f32[128,128], index: 3, kind: output, shape index: {1}]  }
   0x1   :  { %11 = vsyncpa [#allocation3 + $0x1], 0 }
   0x2   :  { %12 = vsyncpa [#allocation6], 0 }
   0x3   :  { %14 = vsyncpa [#allocation6 + $0x1], 0 }
   0x4   :  { %15 = vsyncpa [#allocation4], 0 }
   0x5   :  { %17 = vsyncpa [#allocation4 + $0x1], 0 }
   0x6   :  { %18 = vsyncpa [#allocation9], 0 }
   0x7   :  { %20 = vsyncpa [#allocation9 + $0x1], 0  ;;  %s713_s12 = smov 0   ;;  %s715_s13 = smov 0  }
   0x8   :  { %s717_s14 = smov 0   ;;  %s719_s15 = smov 0  }
   0x9 LB: > { %s734_s16 = sadd.s32 4294967295, %s683_s15   ;;  %s435_s17 = sadd.s32 4294967294, %s683_s15   ;;  %s683_s15 = sphi %s719_s15, %s1003_s15   ;;  %s679_s14 = sphi %s717_s14, %s1002_s14   ;;  %s675_s13 = sphi %s715_s13, %s1001_s13   ;;  %s671_s12 = sphi %s713_s12, %s1000_s12  }
   0xa   : > { %s738_s18 = sadd.s32 1, %s683_s15   ;;  %s33_s19 = sadd.s32 1, %s679_s14 }
   0xb   : > { %s30_s20 = ssub.s32 %s683_s15, %s738_s18  ;;  %p40_p0 = scmp.ne.s32.totalorder %s679_s14, %s675_s13 }
   0xc   : > { %p31_p1 = scmp.eq.s32.totalorder %s30_s20, 0  ;;  %p41_p2 = scmp.eq.s32.totalorder %s683_s15, 0 }
   0xd   : > { %p46_p3 = scmp.ne.s32.totalorder %s675_s13, %s671_s12  ;;  %p47_p4 = scmp.eq.s32.totalorder %s734_s16, 0 }
   0xe   : > { %s750_s21 = scalar_select %p31_p1, %s679_s14, %s33_s19  }
   0xf   : > { %p752_p5 = por %p41_p2, %p40_p0  ;;  %p756_p6 = por %p47_p4, %p46_p3 }
  0x10   : > { %p96_p7 = scmp.eq.s32.totalorder %s734_s16, 3  ;;  %p102_p8 = scmp.eq.s32.totalorder %s435_s17, 3 }
  0x11   : > { %s992_s23 = scalar_select %p756_p6, 1, 0 }
  0x12   : > { %p483_p9 = scmp.lt.s32.totalorder %s683_s15, 4  ;;  %p762_p10 = por %p96_p7, %p40_p0 }
  0x13   : > { %p766_p11 = por %p102_p8, %p46_p3  ;;  %s771_s26 = sand.u32 1, %s679_s14  }
  0x14   : > { %s993_s24 = scalar_select %p762_p10, 1, 0 }
  0x15   : > { %s994_s25 = scalar_select %p766_p11, 1, 0 }
  0x16   : > { %s457_s27 = sshll.u32 %s683_s15, 9  ;;  %s438_s28 = sshll.u32 %s771_s26, 5 }
  0x17   : > { %s780_s4 = scalar_lea.hbm %s985_s0, %s457_s27  ;;  %s152_s5 = scalar_lea.vmem [#allocation2], %s438_s28 }
  0x18   : > { %s159_s6 = sshll.u32 %s152_s5, 4  ;;  %p786_p12 = pnand %p483_p9, %p752_p5  ;;  %s790_s6 = int_to_ptr.vmem [resolvable:$true] %s159_s6 }
  0x19   : > { %s149_s8 = scalar_lea.sflag [#allocation3], %s771_s26  ;;  %s521_s9 = scalar_lea.hbm %s780_s4, 512 }
  0x1a   : > { %p522_p13 = scmp.ne.s32.totalorder %s780_s4, %s521_s9  ;;  %p523_p0 = pneg %p786_p12 }
  0x1b   : > { %s526_s17 = scalar_lea.hbm %s985_s0, 2048  ;;  %p527_p3 = scmp.lt.u32.totalorder %s780_s4, %s985_s0 }
  0x1c   : > { %p524_p1 = pnand %p523_p0, %p522_p13  ;;  %p528_p4 = scmp.lt.u32.totalorder %s526_s17, %s521_s9 }
  0x1d   : > { %p530_p7 = scmp.lt.u32.totalorder %s521_s9, %s780_s4 }
  0x1e   : > { %p525_p2 = pneg %p524_p1  ;;  %p529_p5 = por %p528_p4, %p527_p3 }
  0x20   : > { %p531_p8 = por %p530_p7, %p529_p5 }
  0x22   : > { %p532_p9 = pnand %p531_p8, %p525_p2 }
  0x24   : > { %535 = shalt.err (!%p532_p9)
}
  0x25   : > { %s536_s22 = scalar_lea.vmem %s790_s6, 512  ;;  %s685_s29 = smov [#allocation2]  }
  0x26   : > { %p537_p13 = scmp.ne.s32.totalorder %s790_s6, %s536_s22  ;;  %s541_s30 = sshll.u32 %s685_s29, 4  ;;  %s542_s30 = int_to_ptr.vmem [resolvable:$false] %s541_s30 }
  0x27   : > { %s543_s5 = scalar_lea.vmem %s542_s30, 1024  ;;  %p544_p10 = scmp.lt.s32.totalorder %s790_s6, %s542_s30 }
  0x28   : > { %p539_p1 = pnand %p537_p13, %p523_p0  ;;  %p545_p3 = scmp.lt.s32.totalorder %s543_s5, %s536_s22 }
  0x2a   : > { %p540_p11 = pneg %p539_p1  ;;  %p546_p4 = por %p545_p3, %p544_p10 }
  0x2c   : > { %p547_p5 = pnand %p546_p4, %p540_p11 }
  0x2e   : > { %550 = shalt.err (!%p547_p5)
}
  0x2f   : > { %s686_s9 = smov 128   ;;  %s687_s10 = smov 8  }
  0x30   : > { %472 = dma.hbm_to_vmem [thread:$0]  (!%p786_p12), %s780_s4, 512, %s790_s6, %s149_s8, %s686_s9, %s686_s9, %s687_s10  }
  0x31   : > { %p444_p10 = scmp.ge.s32.totalorder %s683_s15, 1  ;;  %p188_p11 = scmp.lt.s32.totalorder %s683_s15, 5 }
  0x32   : > { %s834_s20 = scalar_lea.hbm %s986_s1, %s457_s27  ;;  %s173_s22 = scalar_lea.vmem [#allocation5], %s438_s28 }
  0x33   : > { %p825_p2 = pnand %p444_p10, %p188_p11  ;;  %s180_s29 = sshll.u32 %s173_s22, 4  ;;  %s838_s29 = int_to_ptr.vmem [resolvable:$true] %s180_s29 }
  0x34   : > { %s170_s4 = scalar_lea.sflag [#allocation6], %s771_s26  ;;  %s551_s6 = scalar_lea.hbm %s834_s20, 512 }
  0x35   : > { %p552_p7 = scmp.ne.s32.totalorder %s834_s20, %s551_s6  ;;  %s556_s27 = scalar_lea.hbm %s986_s1, 2048 }
  0x36   : > { %p557_p13 = scmp.lt.u32.totalorder %s834_s20, %s986_s1  ;;  %p558_p1 = scmp.lt.u32.totalorder %s556_s27, %s551_s6 }
  0x37   : > { %p554_p8 = pnand %p552_p7, %p523_p0  ;;  %p560_p4 = scmp.lt.u32.totalorder %s551_s6, %s834_s20 }
  0x38   : > { %p559_p3 = por %p558_p1, %p557_p13 }
  0x39   : > { %p555_p9 = pneg %p554_p8 }
  0x3a   : > { %p561_p5 = por %p560_p4, %p559_p3 }
  0x3c   : > { %p562_p10 = pnand %p561_p5, %p555_p9 }
  0x3e   : > { %565 = shalt.err (!%p562_p10)
}
  0x3f   : > { %s566_s28 = scalar_lea.vmem %s838_s29, 512  ;;  %s688_s19 = smov [#allocation5]  }
  0x40   : > { %p567_p11 = scmp.ne.s32.totalorder %s838_s29, %s566_s28  ;;  %s571_s22 = sshll.u32 %s688_s19, 4  ;;  %s572_s22 = int_to_ptr.vmem [resolvable:$false] %s571_s22 }
  0x41   : > { %s573_s8 = scalar_lea.vmem %s572_s22, 1024  ;;  %p574_p6 = scmp.lt.s32.totalorder %s838_s29, %s572_s22 }
  0x42   : > { %p569_p7 = pnand %p567_p11, %p523_p0  ;;  %p575_p13 = scmp.lt.s32.totalorder %s573_s8, %s566_s28 }
  0x44   : > { %p570_p8 = pneg %p569_p7  ;;  %p576_p1 = por %p575_p13, %p574_p6 }
  0x46   : > { %p577_p3 = pnand %p576_p1, %p570_p8 }
  0x48   : > { %580 = shalt.err (!%p577_p3)
}
  0x49   : > { %475 = dma.hbm_to_vmem [thread:$0]  (!%p786_p12), %s834_s20, 512, %s838_s29, %s170_s4, %s686_s9, %s686_s9, %s687_s10  }
  0x4a   : > { %192 = sbr.rel (%p825_p2) target bundleno = 135 (0x87), region = 28  ;;  %s872_s6 = sand.u32 (!%p825_p2), 1, %s675_s13  }
  0x4b   : > { %s445_s30 = sshll.u32 (!%p825_p2), %s872_s6, 5  ;;  %s195_s27 = scalar_lea.sflag (!%p825_p2), [#allocation3], %s872_s6 }
  0x4c   : > { %s198_s7 = scalar_lea.vmem (!%p825_p2), [#allocation2], %s445_s30  ;;  %p997_p6 = scmp.ne.s32.totalorder (!%p825_p2), %s992_s23, 0 }
  0x51   : > { %654 = dma.done.wait (%p997_p6), %s195_s27, 512  }
  0x52   : > { %656 = vsyncadd (%p997_p6), %s195_s27, 4294966784  ;;  %s204_s26 = scalar_lea.sflag [#allocation6], %s872_s6  ;;  %s207_s9 = scalar_lea.vmem [#allocation5], %s445_s30 }
  0x53   : > { %658 = dma.done.wait (%p997_p6), %s204_s26, 512  }
  0x54   : > { %660 = vsyncadd (%p997_p6), %s204_s26, 4294966784  ;;  %v244_v0 = vld [vmem:[%s198_s7] sm:$0xff]  ;;  %s885_s10 = scalar_lea.vmem [#allocation7], %s445_s30  ;;  %v245_v2 = vld [vmem:[%s198_s7 + $0x8] sm:$0xff]  ;;  %s888_s20 = scalar_lea.vmem [#allocation8], %s445_s30 }
  0x55   : > { %v248_v1 = vld [vmem:[%s207_s9] sm:$0xff]  ;;  %s291_s11 = sshll.u32 %s885_s10, 4  ;;  %s307_s29 = sshll.u32 %s888_s20, 4  ;;  %v249_v4 = vld [vmem:[%s207_s9 + $0x8] sm:$0xff]  ;;  %v246_v5 = vld [vmem:[%s198_s7 + $0x10] sm:$0xff]  ;;  %s892_s11 = int_to_ptr.vmem [resolvable:$true] %s291_s11  ;;  %s894_s29 = int_to_ptr.vmem [resolvable:$true] %s307_s29 }
  0x56   : > { %v252_v3 = vsub.f32 %v244_v0, %v248_v1  ;;  %v250_v6 = vld [vmem:[%s207_s9 + $0x10] sm:$0xff]  ;;  %s459_s4 = sshll.u32 %s734_s16, 9  ;;  %v253_v7 = vsub.f32 %v245_v2, %v249_v4  ;;  %v247_v9 = vld [vmem:[%s198_s7 + $0x18] sm:$0xff]  ;;  %s273_s22 = scalar_lea.sflag [#allocation4], %s872_s6 }
  0x57   : > { %v254_v8 = vsub.f32 %v246_v5, %v250_v6  ;;  %v251_v10 = vld [vmem:[%s207_s9 + $0x18] sm:$0xff]  ;;  %s899_s5 = scalar_lea.hbm %s987_s2, %s459_s4  ;;  %s910_s19 = scalar_lea.hbm %s988_s3, %s459_s4 }
  0x58   : > { %v256_v11 = vmul.f32 %v252_v3, %v252_v3  ;;  %v255_v12 = vsub.f32 %v247_v9, %v251_v10  ;;  %v264_v13 = vadd.f32 %v252_v3, %v252_v3  ;;  %v257_v14 = vmul.f32 %v253_v7, %v253_v7  ;;  %s581_s8 = scalar_lea.vmem %s892_s11, 512  ;;  %p998_p0 = scmp.ne.s32.totalorder %s993_s24, 0 }
  0x59   : > { %v258_v15 = vmul.f32 %v254_v8, %v254_v8  ;;  %v265_v16 = vadd.f32 %v253_v7, %v253_v7  ;;  %v266_v17 = vadd.f32 %v254_v8, %v254_v8  ;;  %p582_p12 = scmp.ne.s32.totalorder %s892_s11, %s581_s8  ;;  %s689_s30 = smov [#allocation7]  }
  0x5a   : > { %260 = vst [vmem:[%s885_s10] sm:$0xff] %v256_v11  ;;  %v259_v18 = vmul.f32 %v255_v12, %v255_v12  ;;  %268 = vst [vmem:[%s888_s20] sm:$0xff] %v264_v13  ;;  %v267_v19 = vadd.f32 %v255_v12, %v255_v12  ;;  %s585_s27 = sshll.u32 %s689_s30, 4  ;;  %s586_s27 = int_to_ptr.vmem [resolvable:$false] %s585_s27 }
  0x5b   : > { %261 = vst [vmem:[%s885_s10 + $0x8] sm:$0xff] %v257_v14  ;;  %262 = vst [vmem:[%s885_s10 + $0x10] sm:$0xff] %v258_v15  ;;  %p583_p2 = pnand %p582_p12, %p998_p0  ;;  %s587_s7 = scalar_lea.vmem %s586_s27, 1024 }
  0x5c   : > { %269 = vst [vmem:[%s888_s20 + $0x8] sm:$0xff] %v265_v16  ;;  %270 = vst [vmem:[%s888_s20 + $0x10] sm:$0xff] %v266_v17  ;;  %p588_p4 = scmp.lt.s32.totalorder %s892_s11, %s586_s27  ;;  %p589_p5 = scmp.lt.s32.totalorder %s587_s7, %s581_s8 }
  0x5d   : > { %263 = vst [vmem:[%s885_s10 + $0x18] sm:$0xff] %v259_v18  ;;  %271 = vst [vmem:[%s888_s20 + $0x18] sm:$0xff] %v267_v19  ;;  %p584_p9 = pneg %p583_p2 }
  0x5e   : > { %p590_p10 = por %p589_p5, %p588_p4 }
  0x60   : > { %p591_p11 = pnand %p590_p10, %p584_p9 }
  0x62   : > { %594 = shalt.err (!%p591_p11)
}
  0x63   : > { %s595_s26 = scalar_lea.hbm %s899_s5, 512  ;;  %s599_s20 = scalar_lea.hbm %s987_s2, 2048 }
  0x64   : > { %p596_p7 = scmp.ne.s32.totalorder %s899_s5, %s595_s26  ;;  %p600_p1 = scmp.lt.u32.totalorder %s899_s5, %s987_s2 }
  0x65   : > { %p601_p3 = scmp.lt.u32.totalorder %s599_s20, %s595_s26  ;;  %p603_p12 = scmp.lt.u32.totalorder %s595_s26, %s899_s5 }
  0x66   : > { %p597_p8 = pnand %p596_p7, %p998_p0 }
  0x67   : > { %p602_p6 = por %p601_p3, %p600_p1 }
  0x68   : > { %p598_p13 = pneg %p597_p8 }
  0x69   : > { %p604_p2 = por %p603_p12, %p602_p6 }
  0x6b   : > { %p605_p9 = pnand %p604_p2, %p598_p13 }
  0x6d   : > { %608 = shalt.err (!%p605_p9)
}
  0x6e   : > { %s690_s23 = smov 128   ;;  %s691_s17 = smov 8  }
  0x6f   : > { %465 = dma.vmem_to_hbm [thread:$0]  (%p998_p0), %s892_s11, 512, %s899_s5, %s273_s22, %s690_s23, %s690_s23, %s691_s17  }
  0x70   : > { %s278_s28 = scalar_lea.sflag [#allocation9], %s872_s6  ;;  %s609_s8 = scalar_lea.vmem %s894_s29, 512 }
  0x71   : > { %p610_p4 = scmp.ne.s32.totalorder %s894_s29, %s609_s8  ;;  %s692_s30 = smov [#allocation8]  }
  0x72   : > { %s613_s27 = sshll.u32 %s692_s30, 4  ;;  %s614_s27 = int_to_ptr.vmem [resolvable:$false] %s613_s27 }
  0x73   : > { %p611_p5 = pnand %p610_p4, %p998_p0  ;;  %s615_s7 = scalar_lea.vmem %s614_s27, 1024 }
  0x74   : > { %p616_p11 = scmp.lt.s32.totalorder %s894_s29, %s614_s27  ;;  %p617_p7 = scmp.lt.s32.totalorder %s615_s7, %s609_s8 }
  0x75   : > { %p612_p10 = pneg %p611_p5 }
  0x76   : > { %p618_p8 = por %p617_p7, %p616_p11 }
  0x78   : > { %p619_p13 = pnand %p618_p8, %p612_p10 }
  0x7a   : > { %622 = shalt.err (!%p619_p13)
}
  0x7b   : > { %s623_s11 = scalar_lea.hbm %s910_s19, 512  ;;  %s627_s26 = scalar_lea.hbm %s988_s3, 2048 }
  0x7c   : > { %p624_p1 = scmp.ne.s32.totalorder %s910_s19, %s623_s11  ;;  %p628_p12 = scmp.lt.u32.totalorder %s910_s19, %s988_s3 }
  0x7d   : > { %p629_p2 = scmp.lt.u32.totalorder %s627_s26, %s623_s11  ;;  %p631_p4 = scmp.lt.u32.totalorder %s623_s11, %s910_s19 }
  0x7e   : > { %p625_p3 = pnand %p624_p1, %p998_p0 }
  0x7f   : > { %p630_p9 = por %p629_p2, %p628_p12 }
  0x80   : > { %p626_p6 = pneg %p625_p3 }
  0x81   : > { %p632_p5 = por %p631_p4, %p630_p9 }
  0x83   : > { %p633_p10 = pnand %p632_p5, %p626_p6 }
  0x85   : > { %636 = shalt.err (!%p633_p10)
}
  0x86   : > { %466 = dma.vmem_to_hbm [thread:$0]  (%p998_p0), %s894_s29, 512, %s910_s19, %s278_s28, %s690_s23, %s690_s23, %s691_s17  }
  0x87 PF: > { %p484_p11 = scmp.ge.s32.totalorder %s683_s15, 2  ;;  %s322_s20 = sand.u32 1, %s671_s12  }
  0x88   : > { %p999_p7 = scmp.ne.s32.totalorder %s994_s25, 0  ;;  %s323_s4 = scalar_lea.sflag [#allocation4], %s322_s20 }
  0x8a   : > { %p477_p8 = pnand %p484_p11, %p999_p7 }
  0x8c   : > { %662 = dma.done.wait (!%p477_p8), %s323_s4, 512  }
  0x8d   : > { %664 = vsyncadd (!%p477_p8), %s323_s4, 4294966784  ;;  %s332_s24 = scalar_lea.sflag [#allocation9], %s322_s20 }
  0x8e   : > { %666 = dma.done.wait (!%p477_p8), %s332_s24, 512  }
  0x8f   : > { %668 = vsyncadd (!%p477_p8), %s332_s24, 4294966784  ;;  %p23_p0 = scmp.ge.s32.totalorder %s738_s18, 6   ;;  %s1000_s12 = smov %s675_s13 }
  0x90   : > { %s1001_s13 = smov %s679_s14  ;;  %s1002_s14 = smov %s750_s21 }
  0x91   : > { %s1003_s15 = smov %s738_s18  ;;  %25 = sbr.rel (!%p23_p0) target bundleno = 9 (0x9), region = 103 }
  0x98   :  { %337 = vsyncpa [#allocation3], 1 }
  0x99   :  { %339 = vsyncpa [#allocation3 + $0x1], 1 }
  0x9a   :  { %340 = vsyncpa [#allocation6], 1 }
  0x9b   :  { %342 = vsyncpa [#allocation6 + $0x1], 1 }
  0x9c   :  { %343 = vsyncpa [#allocation4], 1 }
  0x9d   :  { %345 = vsyncpa [#allocation4 + $0x1], 1 }
  0x9e   :  { %346 = vsyncpa [#allocation9], 1 }
  0x9f   :  { %348 = vsyncpa [#allocation9 + $0x1], 1 }

</bundles_post_ra>
